<compile_context>
chip_gen: v5e
topology: v5e:2x2
jax: 0.10.0
libtpu: 0.0.40
codegen_flags: <defaults>
</compile_context>

<pallas_src>
import functools

import jax
import jax.numpy as jnp
from jax.experimental import pallas as pl
from jax.experimental.pallas import tpu as pltpu


# ---------------------------------------------------------------------------
# Tiling / VMEM helpers
# ---------------------------------------------------------------------------
def _pick_tile_l(hw: int, target: int = 2048) -> int:
    """Lane tile over H*W: largest multiple of 128 <= target dividing hw,
    or hw itself (full dim is always a legal block)."""
    if hw <= target:
        return hw
    t = (target // 128) * 128
    while t >= 128:
        if hw % t == 0:
            return t
        t -= 128
    return hw


def _vmem_limit(request_bytes: int) -> int:
    # Default scoped VMEM is 16/32 MiB; raise it explicitly, but stay within
    # v7x's 64 MiB physical VMEM.
    return int(min(max(request_bytes, 32 << 20), 64 << 20))


# ---------------------------------------------------------------------------
# Fused kernel: grid = (phase, N, spatial_tiles)
#   phase 0: y = W @ x tile (MXU), store y into VMEM-resident scratch,
#            accumulate per-channel sum / sum-of-squares.
#   phase boundary (last step of phase 0): fold stats into scale/shift.
#   phase 1: out = y * scale + shift  (read y from VMEM, write lane-dense out).
# ---------------------------------------------------------------------------
def _embed_fused_kernel(x_ref, w_ref, gamma_ref, beta_ref, o_ref,
                        y_ref, sum_ref, sq_ref, scale_ref, shift_ref,
                        *, inv_m, eps):
    p = pl.program_id(0)          # phase
    n = pl.program_id(1)          # batch index
    t = pl.program_id(2)          # spatial tile index
    n_t = pl.num_programs(2)
    slot = n * n_t + t            # flat tile index into the resident y scratch

    @pl.when(jnp.logical_and(p == 0, jnp.logical_and(n == 0, t == 0)))
    def _init():
        sum_ref[...] = jnp.zeros_like(sum_ref)
        sq_ref[...] = jnp.zeros_like(sq_ref)

    @pl.when(p == 0)
    def _conv_and_stats():
        # (Cout, Cin) @ (Cin, tile_l) on the MXU; spatial on the lane axis.
        y = jnp.dot(w_ref[...], x_ref[0], preferred_element_type=jnp.float32)
        y_ref[slot] = y
        sum_ref[...] += jnp.sum(y, axis=-1, keepdims=True)
        sq_ref[...] += jnp.sum(y * y, axis=-1, keepdims=True)

    last_phase0 = jnp.logical_and(
        p == 0,
        jnp.logical_and(n == pl.num_programs(1) - 1, t == n_t - 1))

    @pl.when(last_phase0)
    def _finalize_stats():
        mean = sum_ref[...] * inv_m
        var = sq_ref[...] * inv_m - mean * mean        # biased variance (BN fwd)
        inv_std = jax.lax.rsqrt(var + eps)
        scale = gamma_ref[...] * inv_std
        scale_ref[...] = scale
        shift_ref[...] = beta_ref[...] - mean * scale

    @pl.when(p == 1)
    def _bn_apply():
        o_ref[0] = y_ref[slot] * scale_ref[...] + shift_ref[...]


def _embed_fused(x3, w, gamma2, beta2, eps, tile_l, vmem_limit):
    N, Cin, HW = x3.shape
    Cout = w.shape[0]
    n_t = HW // tile_l

    kernel = functools.partial(_embed_fused_kernel,
                               inv_m=1.0 / float(N * HW), eps=float(eps))

    return pl.pallas_call(
        kernel,
        out_shape=jax.ShapeDtypeStruct((N, Cout, HW), jnp.float32),
        grid_spec=pltpu.PrefetchScalarGridSpec(
            num_scalar_prefetch=0,
            grid=(2, N, n_t),
            in_specs=[
                # x is only consumed in phase 0; pin to block (0,0,0) in
                # phase 1 so it is not re-streamed from HBM.
                pl.BlockSpec((1, Cin, tile_l),
                             lambda p, n, t: (n * (1 - p), 0, t * (1 - p))),
                pl.BlockSpec((Cout, Cin), lambda p, n, t: (0, 0)),
                pl.BlockSpec((Cout, 1), lambda p, n, t: (0, 0)),
                pl.BlockSpec((Cout, 1), lambda p, n, t: (0, 0)),
            ],
            # Output is only written in phase 1; pin it to block (0,0,0)
            # during phase 0 so no garbage block is ever flushed before its
            # phase-1 rewrite (block index never changes during phase 0).
            out_specs=pl.BlockSpec((1, Cout, tile_l),
                                   lambda p, n, t: (n * p, 0, t * p)),
            scratch_shapes=[
                pltpu.VMEM((N * n_t, Cout, tile_l), jnp.float32),  # resident y
                pltpu.VMEM((Cout, 1), jnp.float32),                # sum
                pltpu.VMEM((Cout, 1), jnp.float32),                # sum of sq
                pltpu.VMEM((Cout, 1), jnp.float32),                # scale
                pltpu.VMEM((Cout, 1), jnp.float32),                # shift
            ],
        ),
        compiler_params=pltpu.CompilerParams(
            dimension_semantics=("arbitrary", "arbitrary", "arbitrary"),
            vmem_limit_bytes=vmem_limit),
    )(x3, w, gamma2, beta2)


# ---------------------------------------------------------------------------
# Fallback (large problems where y does not fit VMEM): two lane-dense passes.
# Kernel A emits per-tile partial sums so its grid is fully "parallel"
# (shards across v7x's 2 TensorCores); the O(tiles*Cout) reduction is done
# in the wrapper.
# ---------------------------------------------------------------------------
def _conv_stats_kernel(x_ref, w_ref, y_ref, psum_ref, psq_ref):
    y = jnp.dot(w_ref[...], x_ref[0], preferred_element_type=jnp.float32)
    y_ref[0] = y
    psum_ref[0] = jnp.sum(y, axis=-1, keepdims=True)
    psq_ref[0] = jnp.sum(y * y, axis=-1, keepdims=True)


def _bn_apply_kernel(y_ref, scale_ref, shift_ref, o_ref):
    o_ref[0] = y_ref[0] * scale_ref[...] + shift_ref[...]


def _embed_two_pass(x3, w, gamma2, beta2, eps, tile_l, vmem_limit):
    N, Cin, HW = x3.shape
    Cout = w.shape[0]
    n_t = HW // tile_l
    grid = (N, n_t)

    y, psum, psq = pl.pallas_call(
        _conv_stats_kernel,
        out_shape=(
            jax.ShapeDtypeStruct((N, Cout, HW), jnp.float32),
            jax.ShapeDtypeStruct((N * n_t, Cout, 1), jnp.float32),
            jax.ShapeDtypeStruct((N * n_t, Cout, 1), jnp.float32),
        ),
        grid_spec=pltpu.PrefetchScalarGridSpec(
            num_scalar_prefetch=0,
            grid=grid,
            in_specs=[
                pl.BlockSpec((1, Cin, tile_l), lambda n, t: (n, 0, t)),
                pl.BlockSpec((Cout, Cin), lambda n, t: (0, 0)),
            ],
            out_specs=[
                pl.BlockSpec((1, Cout, tile_l), lambda n, t: (n, 0, t)),
                pl.BlockSpec((1, Cout, 1), lambda n, t: (n * n_t + t, 0, 0)),
                pl.BlockSpec((1, Cout, 1), lambda n, t: (n * n_t + t, 0, 0)),
            ],
        ),
        compiler_params=pltpu.CompilerParams(
            dimension_semantics=("parallel", "parallel"),
            vmem_limit_bytes=vmem_limit),
    )(x3, w)

    # Tiny O(tiles * Cout) glue: reduce partials, fold into affine params.
    m = jnp.float32(N * HW)
    ch_sum = jnp.sum(psum[:, :, 0], axis=0)              # (Cout,)
    ch_sq = jnp.sum(psq[:, :, 0], axis=0)                # (Cout,)
    mean = ch_sum / m
    var = ch_sq / m - mean * mean                        # biased variance
    inv_std = jax.lax.rsqrt(var + jnp.float32(eps))
    g = gamma2[:, 0]
    scale = (g * inv_std).reshape(Cout, 1)
    shift = (beta2[:, 0] - mean * g * inv_std).reshape(Cout, 1)

    # TODO(synk): a bf16 y intermediate would cut this path's HBM traffic further.
    out = pl.pallas_call(
        _bn_apply_kernel,
        out_shape=jax.ShapeDtypeStruct((N, Cout, HW), jnp.float32),
        grid_spec=pltpu.PrefetchScalarGridSpec(
            num_scalar_prefetch=0,
            grid=grid,
            in_specs=[
                pl.BlockSpec((1, Cout, tile_l), lambda n, t: (n, 0, t)),
                pl.BlockSpec((Cout, 1), lambda n, t: (0, 0)),
                pl.BlockSpec((Cout, 1), lambda n, t: (0, 0)),
            ],
            out_specs=pl.BlockSpec((1, Cout, tile_l), lambda n, t: (n, 0, t)),
        ),
        compiler_params=pltpu.CompilerParams(
            dimension_semantics=("parallel", "parallel"),
            vmem_limit_bytes=vmem_limit),
    )(y, scale, shift)
    return out


# ---------------------------------------------------------------------------
# Public wrapper
# ---------------------------------------------------------------------------
def embed_forward(x_nchw, conv_w, gamma, beta, *, eps=1e-5,
                  max_fused_vmem_bytes=40 * 1024 * 1024,
                  force_two_pass=False):
    """Embed forward: 1x1 Conv2d (no bias) followed by BatchNorm2d (training fwd).

    x_nchw : (N, Cin, H, W) float32
    conv_w : (Cout, Cin, 1, 1) or (Cout, Cin) float32
    gamma  : (Cout,) float32    beta : (Cout,) float32
    returns: (N, Cout, H, W) float32
    """
    N, Cin, H, W = x_nchw.shape
    Cout = conv_w.shape[0]
    HW = H * W

    # Free contiguous views only — no transposes, no extra HBM passes.
    x3 = x_nchw.reshape(N, Cin, HW).astype(jnp.float32)
    w = conv_w.reshape(Cout, Cin).astype(jnp.float32)
    gamma2 = gamma.reshape(Cout, 1).astype(jnp.float32)
    beta2 = beta.reshape(Cout, 1).astype(jnp.float32)

    tile_l = _pick_tile_l(HW)
    n_t = HW // tile_l

    # VMEM budgeting (bytes): resident y + double-buffered pipeline blocks.
    blk = 4 * (Cin * tile_l + Cout * tile_l + Cout * Cin + 4 * Cout)
    y_bytes = 4 * N * Cout * HW
    fused_bytes = y_bytes + 2 * blk

    if (not force_two_pass) and fused_bytes <= max_fused_vmem_bytes:
        out3 = _embed_fused(x3, w, gamma2, beta2, eps, tile_l,
                            _vmem_limit(fused_bytes + (8 << 20)))
    else:
        out3 = _embed_two_pass(x3, w, gamma2, beta2, eps, tile_l,
                               _vmem_limit(4 * blk + (16 << 20)))

    return out3.reshape(N, Cout, H, W)


if __name__ == "__main__":
    # Small shapes consistent with the module (dim_in -> dim_out, NCHW input).
    N, Cin, H, W = 2, 32, 16, 16
    Cout = 16

    key = jax.random.PRNGKey(0)
    kx, kw, kg, kb = jax.random.split(key, 4)

    x = jax.random.normal(kx, (N, Cin, H, W), dtype=jnp.float32)
    # Conv2d(kernel_size=1, bias=False) weight.
    conv_w = jax.random.normal(kw, (Cout, Cin, 1, 1), dtype=jnp.float32) * (1.0 / jnp.sqrt(Cin))
    # BatchNorm2d affine parameters (non-trivial values to exercise the affine path).
    gamma = 1.0 + 0.1 * jax.random.normal(kg, (Cout,), dtype=jnp.float32)
    beta = 0.1 * jax.random.normal(kb, (Cout,), dtype=jnp.float32)

    out = embed_forward(x, conv_w, gamma, beta)
    jax.block_until_ready(out)

    # Pure-JAX reference (1x1 conv + training-mode BN forward, biased variance).
    w2 = conv_w[:, :, 0, 0]
    y_ref = jnp.einsum('oc,nchw->nohw', w2, x)
    mu = y_ref.mean(axis=(0, 2, 3), keepdims=True)
    var = y_ref.var(axis=(0, 2, 3), keepdims=True)
    ref = (y_ref - mu) * jax.lax.rsqrt(var + 1e-5)
    ref = ref * gamma.reshape(1, Cout, 1, 1) + beta.reshape(1, Cout, 1, 1)

    assert out.shape == ref.shape
    assert jnp.allclose(out, ref, atol=2e-3, rtol=2e-3), "fused path mismatch vs reference"

    # Also exercise the large-problem fallback (two-pass, HBM-resident y) once.
    out2 = embed_forward(x, conv_w, gamma, beta, force_two_pass=True)
    jax.block_until_ready(out2)
    assert jnp.allclose(out2, ref, atol=2e-3, rtol=2e-3), "two-pass path mismatch vs reference"

    print("KERNEL_OK")
</pallas_src>

<mosaic_0001>
module attributes {stable_mosaic.version = 11 : i64} {
  func.func @_embed_fused_kernel(%arg0: i32, %arg1: i32, %arg2: i32, %arg3: memref<1x32x256xf32, #tpu.memory_space<vmem>>, %arg4: memref<16x32xf32, #tpu.memory_space<vmem>>, %arg5: memref<16x1xf32, #tpu.memory_space<vmem>>, %arg6: memref<16x1xf32, #tpu.memory_space<vmem>>, %arg7: memref<1x16x256xf32, #tpu.memory_space<vmem>>, %arg8: memref<2x16x256xf32, #tpu.memory_space<vmem>>, %arg9: memref<16x1xf32, #tpu.memory_space<vmem>>, %arg10: memref<16x1xf32, #tpu.memory_space<vmem>>, %arg11: memref<16x1xf32, #tpu.memory_space<vmem>>, %arg12: memref<16x1xf32, #tpu.memory_space<vmem>>) attributes {dimension_semantics = [#tpu.dimension_semantics<arbitrary>, #tpu.dimension_semantics<arbitrary>, #tpu.dimension_semantics<arbitrary>], iteration_bounds = array<i64: 2, 2, 1>, scalar_prefetch = 0 : i64, scratch_operands = 5 : i64, tpu.core_type = #tpu.core_type<tc>, window_params = [{transform_indices = @transform_0, window_bounds = array<i64: 1, 32, 256>}, {pipeline_mode = #tpu.pipeline_mode<synchronous>, transform_indices = @transform_1, window_bounds = array<i64: 16, 32>}, {pipeline_mode = #tpu.pipeline_mode<synchronous>, transform_indices = @transform_2, window_bounds = array<i64: 16, 1>}, {pipeline_mode = #tpu.pipeline_mode<synchronous>, transform_indices = @transform_3, window_bounds = array<i64: 16, 1>}, {transform_indices = @transform_4, window_bounds = array<i64: 1, 16, 256>}]} {
    %c1_i32 = arith.constant 1 : i32
    %0 = arith.muli %arg1, %c1_i32 : i32
    %1 = arith.addi %0, %arg2 : i32
    %c0_i32 = arith.constant 0 : i32
    %2 = arith.cmpi eq, %arg0, %c0_i32 : i32
    %c0_i32_0 = arith.constant 0 : i32
    %3 = arith.cmpi eq, %arg1, %c0_i32_0 : i32
    %c0_i32_1 = arith.constant 0 : i32
    %4 = arith.cmpi eq, %arg2, %c0_i32_1 : i32
    %5 = arith.andi %3, %4 : i1
    %6 = arith.andi %2, %5 : i1
    %7 = arith.extui %6 : i1 to i32
    %c0_i32_2 = arith.constant 0 : i32
    %8 = arith.cmpi ne, %7, %c0_i32_2 : i32
    scf.if %8 {
      %cst = arith.constant 0.000000e+00 : f32
      %22 = vector.broadcast %cst : f32 to vector<16x1xf32>
      %c0 = arith.constant 0 : index
      %c0_11 = arith.constant 0 : index
      %23 = vector.load %arg9[%c0, %c0_11] : memref<16x1xf32, #tpu.memory_space<vmem>>, vector<16x1xf32>
      tpu.vector_store %arg9[%c0, %c0_11], %22 {strides = array<i32>} : memref<16x1xf32, #tpu.memory_space<vmem>>, vector<16x1xf32>,
      %cst_12 = arith.constant 0.000000e+00 : f32
      %24 = vector.broadcast %cst_12 : f32 to vector<16x1xf32>
      %c0_13 = arith.constant 0 : index
      %c0_14 = arith.constant 0 : index
      %25 = vector.load %arg10[%c0_13, %c0_14] : memref<16x1xf32, #tpu.memory_space<vmem>>, vector<16x1xf32>
      tpu.vector_store %arg10[%c0_13, %c0_14], %24 {strides = array<i32>} : memref<16x1xf32, #tpu.memory_space<vmem>>, vector<16x1xf32>,
    } else {
    }
    %c0_i32_3 = arith.constant 0 : i32
    %9 = arith.cmpi eq, %arg0, %c0_i32_3 : i32
    %10 = arith.extui %9 : i1 to i32
    %c0_i32_4 = arith.constant 0 : i32
    %11 = arith.cmpi ne, %10, %c0_i32_4 : i32
    scf.if %11 {
      %c0 = arith.constant 0 : index
      %c0_11 = arith.constant 0 : index
      %22 = vector.load %arg4[%c0, %c0_11] : memref<16x32xf32, #tpu.memory_space<vmem>>, vector<16x32xf32>
      %c0_12 = arith.constant 0 : index
      %c0_13 = arith.constant 0 : index
      %c0_14 = arith.constant 0 : index
      %23 = vector.load %arg3[%c0_12, %c0_13, %c0_14] : memref<1x32x256xf32, #tpu.memory_space<vmem>>, vector<1x32x256xf32>
      %24 = vector.shape_cast %23 : vector<1x32x256xf32> to vector<32x256xf32>
      %cst = arith.constant dense<0.000000e+00> : vector<16x256xf32>
      %25 = tpu.matmul %22, %24, %cst {dimension_numbers = #tpu.dot_dimension_numbers<[1], [0], [0], [1], [0, 0, 1, 1], [], []>} : vector<16x32xf32>, vector<32x256xf32>, vector<16x256xf32> -> vector<16x256xf32>
      %26 = arith.index_cast %1 : i32 to index
      %c0_15 = arith.constant 0 : index
      %c0_16 = arith.constant 0 : index
      %27 = vector.load %arg8[%26, %c0_15, %c0_16] : memref<2x16x256xf32, #tpu.memory_space<vmem>>, vector<1x16x256xf32>
      %28 = vector.shape_cast %27 : vector<1x16x256xf32> to vector<16x256xf32>
      %29 = vector.shape_cast %25 : vector<16x256xf32> to vector<1x16x256xf32>
      tpu.vector_store %arg8[%26, %c0_15, %c0_16], %29 {strides = array<i32>} : memref<2x16x256xf32, #tpu.memory_space<vmem>>, vector<1x16x256xf32>,
      %c0_17 = arith.constant 0 : index
      %c0_18 = arith.constant 0 : index
      %30 = vector.load %arg9[%c0_17, %c0_18] : memref<16x1xf32, #tpu.memory_space<vmem>>, vector<16x1xf32>
      %cst_19 = arith.constant dense<0.000000e+00> : vector<16xf32>
      %31 = vector.multi_reduction <add>, %25, %cst_19 [1] : vector<16x256xf32> to vector<16xf32>
      %32 = vector.shape_cast %31 : vector<16xf32> to vector<16x1xf32>
      %33 = arith.addf %30, %32 : vector<16x1xf32>
      %c0_20 = arith.constant 0 : index
      %c0_21 = arith.constant 0 : index
      %34 = vector.load %arg9[%c0_20, %c0_21] : memref<16x1xf32, #tpu.memory_space<vmem>>, vector<16x1xf32>
      tpu.vector_store %arg9[%c0_20, %c0_21], %33 {strides = array<i32>} : memref<16x1xf32, #tpu.memory_space<vmem>>, vector<16x1xf32>,
      %c0_22 = arith.constant 0 : index
      %c0_23 = arith.constant 0 : index
      %35 = vector.load %arg10[%c0_22, %c0_23] : memref<16x1xf32, #tpu.memory_space<vmem>>, vector<16x1xf32>
      %36 = arith.mulf %25, %25 : vector<16x256xf32>
      %cst_24 = arith.constant dense<0.000000e+00> : vector<16xf32>
      %37 = vector.multi_reduction <add>, %36, %cst_24 [1] : vector<16x256xf32> to vector<16xf32>
      %38 = vector.shape_cast %37 : vector<16xf32> to vector<16x1xf32>
      %39 = arith.addf %35, %38 : vector<16x1xf32>
      %c0_25 = arith.constant 0 : index
      %c0_26 = arith.constant 0 : index
      %40 = vector.load %arg10[%c0_25, %c0_26] : memref<16x1xf32, #tpu.memory_space<vmem>>, vector<16x1xf32>
      tpu.vector_store %arg10[%c0_25, %c0_26], %39 {strides = array<i32>} : memref<16x1xf32, #tpu.memory_space<vmem>>, vector<16x1xf32>,
    } else {
    }
    %c0_i32_5 = arith.constant 0 : i32
    %12 = arith.cmpi eq, %arg0, %c0_i32_5 : i32
    %c1_i32_6 = arith.constant 1 : i32
    %13 = arith.cmpi eq, %arg1, %c1_i32_6 : i32
    %c0_i32_7 = arith.constant 0 : i32
    %14 = arith.cmpi eq, %arg2, %c0_i32_7 : i32
    %15 = arith.andi %13, %14 : i1
    %16 = arith.andi %12, %15 : i1
    %17 = arith.extui %16 : i1 to i32
    %c0_i32_8 = arith.constant 0 : i32
    %18 = arith.cmpi ne, %17, %c0_i32_8 : i32
    scf.if %18 {
      %c0 = arith.constant 0 : index
      %c0_11 = arith.constant 0 : index
      %22 = vector.load %arg9[%c0, %c0_11] : memref<16x1xf32, #tpu.memory_space<vmem>>, vector<16x1xf32>
      %cst = arith.constant 0.001953125 : f32
      %23 = vector.broadcast %cst : f32 to vector<16x1xf32>
      %24 = arith.mulf %22, %23 : vector<16x1xf32>
      %c0_12 = arith.constant 0 : index
      %c0_13 = arith.constant 0 : index
      %25 = vector.load %arg10[%c0_12, %c0_13] : memref<16x1xf32, #tpu.memory_space<vmem>>, vector<16x1xf32>
      %cst_14 = arith.constant 0.001953125 : f32
      %26 = vector.broadcast %cst_14 : f32 to vector<16x1xf32>
      %27 = arith.mulf %25, %26 : vector<16x1xf32>
      %28 = arith.mulf %24, %24 : vector<16x1xf32>
      %29 = arith.subf %27, %28 : vector<16x1xf32>
      %cst_15 = arith.constant 9.99999974E-6 : f32
      %30 = vector.broadcast %cst_15 : f32 to vector<16x1xf32>
      %31 = arith.addf %29, %30 : vector<16x1xf32>
      %32 = math.rsqrt %31 : vector<16x1xf32>
      %c0_16 = arith.constant 0 : index
      %c0_17 = arith.constant 0 : index
      %33 = vector.load %arg5[%c0_16, %c0_17] : memref<16x1xf32, #tpu.memory_space<vmem>>, vector<16x1xf32>
      %34 = arith.mulf %33, %32 : vector<16x1xf32>
      %c0_18 = arith.constant 0 : index
      %c0_19 = arith.constant 0 : index
      %35 = vector.load %arg11[%c0_18, %c0_19] : memref<16x1xf32, #tpu.memory_space<vmem>>, vector<16x1xf32>
      tpu.vector_store %arg11[%c0_18, %c0_19], %34 {strides = array<i32>} : memref<16x1xf32, #tpu.memory_space<vmem>>, vector<16x1xf32>,
      %c0_20 = arith.constant 0 : index
      %c0_21 = arith.constant 0 : index
      %36 = vector.load %arg6[%c0_20, %c0_21] : memref<16x1xf32, #tpu.memory_space<vmem>>, vector<16x1xf32>
      %37 = arith.mulf %24, %34 : vector<16x1xf32>
      %38 = arith.subf %36, %37 : vector<16x1xf32>
      %c0_22 = arith.constant 0 : index
      %c0_23 = arith.constant 0 : index
      %39 = vector.load %arg12[%c0_22, %c0_23] : memref<16x1xf32, #tpu.memory_space<vmem>>, vector<16x1xf32>
      tpu.vector_store %arg12[%c0_22, %c0_23], %38 {strides = array<i32>} : memref<16x1xf32, #tpu.memory_space<vmem>>, vector<16x1xf32>,
    } else {
    }
    %c1_i32_9 = arith.constant 1 : i32
    %19 = arith.cmpi eq, %arg0, %c1_i32_9 : i32
    %20 = arith.extui %19 : i1 to i32
    %c0_i32_10 = arith.constant 0 : i32
    %21 = arith.cmpi ne, %20, %c0_i32_10 : i32
    scf.if %21 {
      %22 = arith.index_cast %1 : i32 to index
      %c0 = arith.constant 0 : index
      %c0_11 = arith.constant 0 : index
      %23 = vector.load %arg8[%22, %c0, %c0_11] : memref<2x16x256xf32, #tpu.memory_space<vmem>>, vector<1x16x256xf32>
      %24 = vector.shape_cast %23 : vector<1x16x256xf32> to vector<16x256xf32>
      %c0_12 = arith.constant 0 : index
      %c0_13 = arith.constant 0 : index
      %25 = vector.load %arg11[%c0_12, %c0_13] : memref<16x1xf32, #tpu.memory_space<vmem>>, vector<16x1xf32>
      %26 = vector.broadcast %25 : vector<16x1xf32> to vector<16x256xf32>
      %27 = arith.mulf %24, %26 : vector<16x256xf32>
      %c0_14 = arith.constant 0 : index
      %c0_15 = arith.constant 0 : index
      %28 = vector.load %arg12[%c0_14, %c0_15] : memref<16x1xf32, #tpu.memory_space<vmem>>, vector<16x1xf32>
      %29 = vector.broadcast %28 : vector<16x1xf32> to vector<16x256xf32>
      %30 = arith.addf %27, %29 : vector<16x256xf32>
      %c0_16 = arith.constant 0 : index
      %c0_17 = arith.constant 0 : index
      %c0_18 = arith.constant 0 : index
      %31 = vector.load %arg7[%c0_16, %c0_17, %c0_18] : memref<1x16x256xf32, #tpu.memory_space<vmem>>, vector<1x16x256xf32>
      %32 = vector.shape_cast %31 : vector<1x16x256xf32> to vector<16x256xf32>
      %33 = vector.shape_cast %30 : vector<16x256xf32> to vector<1x16x256xf32>
      tpu.vector_store %arg7[%c0_16, %c0_17, %c0_18], %33 {strides = array<i32>} : memref<1x16x256xf32, #tpu.memory_space<vmem>>, vector<1x16x256xf32>,
    } else {
    }
    return
  }
  func.func @transform_0(%arg0: i32, %arg1: i32, %arg2: i32) -> (i32, i32, i32) {
    %c1_i32 = arith.constant 1 : i32
    %0 = arith.subi %c1_i32, %arg0 : i32
    %1 = arith.muli %arg1, %0 : i32
    %c1_i32_0 = arith.constant 1 : i32
    %2 = arith.subi %c1_i32_0, %arg0 : i32
    %3 = arith.muli %arg2, %2 : i32
    %c0_i32 = arith.constant 0 : i32
    %c0_i32_1 = arith.constant 0 : i32
    return %1, %c0_i32, %3 : i32, i32, i32
  }
  func.func @transform_1(%arg0: i32, %arg1: i32, %arg2: i32) -> (i32, i32) {
    %c0_i32 = arith.constant 0 : i32
    %c0_i32_0 = arith.constant 0 : i32
    %c0_i32_1 = arith.constant 0 : i32
    return %c0_i32, %c0_i32_0 : i32, i32
  }
  func.func @transform_2(%arg0: i32, %arg1: i32, %arg2: i32) -> (i32, i32) {
    %c0_i32 = arith.constant 0 : i32
    %c0_i32_0 = arith.constant 0 : i32
    %c0_i32_1 = arith.constant 0 : i32
    return %c0_i32, %c0_i32_0 : i32, i32
  }
  func.func @transform_3(%arg0: i32, %arg1: i32, %arg2: i32) -> (i32, i32) {
    %c0_i32 = arith.constant 0 : i32
    %c0_i32_0 = arith.constant 0 : i32
    %c0_i32_1 = arith.constant 0 : i32
    return %c0_i32, %c0_i32_0 : i32, i32
  }
  func.func @transform_4(%arg0: i32, %arg1: i32, %arg2: i32) -> (i32, i32, i32) {
    %0 = arith.muli %arg1, %arg0 : i32
    %1 = arith.muli %arg2, %arg0 : i32
    %c0_i32 = arith.constant 0 : i32
    %c0_i32_0 = arith.constant 0 : i32
    return %0, %c0_i32, %1 : i32, i32, i32
  }
}

</mosaic_0001>

<bundles_post_ra>
// kernel: tpu_custom_call.1
= control target key start
LH: loop header
LB: loop body
LE: loop exit
PB: predicated region body
PF: predicated region fallthrough
CT: control target
= control target key end

     0   :  { %9 = vsyncpa [#allocation8], 0  ;;  %s1167_s0 = inlined_call_operand.hbm [shape: f32[2,32,256], index: 0, kind: input, shape index: {}]   ;;  %s1168_s1 = inlined_call_operand.vmem [shape: f32[16,32], index: 1, kind: input, shape index: {}]   ;;  %s1169_s2 = inlined_call_operand.vmem [shape: f32[16,1], index: 2, kind: input, shape index: {}]   ;;  %s1170_s3 = inlined_call_operand.vmem [shape: f32[16,1], index: 3, kind: input, shape index: {}]   ;;  %s1171_s4 = inlined_call_operand.hbm [shape: f32[2,16,256], index: 4, kind: output, shape index: {}]  }
   0x1   :  { %11 = vsyncpa [#allocation8 + $0x1], 0 }
   0x2   :  { %12 = vsyncpa [#allocation9], 0 }
   0x3   :  { %14 = vsyncpa [#allocation9 + $0x1], 0  ;;  %s942_s15 = smov 0   ;;  %s944_s16 = smov 0  }
   0x4   :  { %s946_s17 = smov 0   ;;  %s948_s18 = smov 0  }
   0x5   :  { %s950_s19 = smov 0   ;;  %s952_s20 = smov 0  }
   0x6   :  { %s954_s21 = smov 0   ;;  %s956_s22 = smov 0  }
   0x7   :  { %s958_s23 = smov 0   ;;  %s960_s24 = smov 0  }
   0x8   :  { %s962_s25 = smov 0  }
   0x9 LB: > { %1176 = sst [smem:[#allocation13_spill]] %s901_s23  ;;  %s602_s26 = sadd.s32 4294967295, %s909_s25   ;;  %s909_s25 = sphi %s962_s25, %s20_s25   ;;  %s905_s24 = sphi %s960_s24, %s1197_s24   ;;  %s901_s23 = sphi %s958_s23, %s1189_s23   ;;  %s897_s22 = sphi %s956_s22, %s1188_s22   ;;  %s893_s21 = sphi %s954_s21, %s1187_s21   ;;  %s889_s20 = sphi %s952_s20, %s1196_s20   ;;  %s885_s19 = sphi %s950_s19, %s1195_s19   ;;  %s881_s18 = sphi %s948_s18, %s1194_s18   ;;  %s877_s17 = sphi %s946_s17, %s1193_s17   ;;  %s873_s16 = sphi %s944_s16, %s1192_s16   ;;  %s869_s15 = sphi %s942_s15, %s1191_s15  }
   0xa   : > { %1177 = sst [smem:[#allocation14_spill]] %s905_s24  ;;  %s35_s28 = sadd.s32 1, %s901_s23 }
   0xb   : > { %s39_s29 = sadd.s32 1, %s905_s24  ;;  %p37_p0 = scmp.ge.s32.totalorder %s35_s28, 2 }
   0xc   : > { %s43_s30 = ssub.s32 1, %s905_s24  ;;  %s54_s6 = sadd.s32 1, %s889_s20 }
   0xd   : > { %s1001_s5 = smul.u32 %s901_s23, %s43_s30  ;;  %s1199_s28 = smov (%p37_p0, %s35_s28), 0 }
   0xe   : > { %1178 = sst [smem:[#allocation15_spill]] %s1199_s28  ;;  %s1201_s29 = smov (!%p37_p0, %s39_s29), %s905_s24 }
   0xf   : > { %p61_p1 = scmp.ne.s32.totalorder %s889_s20, %s885_s19  ;;  %p62_p2 = scmp.eq.s32.totalorder %s909_s25, 0 }
  0x10   : > { %p41_p3 = scmp.ge.s32.totalorder %s1201_s29, 2  ;;  %p67_p4 = scmp.ne.s32.totalorder %s885_s19, %s881_s18 }
  0x11   : > { %p1011_p5 = por %p62_p2, %p61_p1  ;;  %p68_p6 = scmp.eq.s32.totalorder %s602_s26, 0 }
  0x12   : > { %s1203_s29 = smov (%p41_p3, %s1201_s29), 0  ;;  %s140_s9 = smul.u32 %s901_s23, %s905_s24 }
  0x13   : > { %1180 = sst [smem:[#allocation16_spill]] %s1203_s29  ;;  %p1017_p7 = por %p68_p6, %p67_p4 }
  0x14   : > { %s46_s10 = ssub.s32 1, %s1203_s29  ;;  %s142_s11 = smul.u32 %s1203_s29, %s1199_s28 }
  0x15   : > { %s47_s12 = smul.u32 %s46_s10, %s1199_s28  ;;  %s149_s13 = sadd.s32 1, %s877_s17 }
  0x16   : > { %s144_s14 = ssub.s32 %s140_s9, %s142_s11  ;;  %p159_p8 = scmp.ne.s32.totalorder %s877_s17, %s873_s16 }
  0x17   : > { %s49_s18 = ssub.s32 %s1001_s5, %s47_s12  ;;  %p147_p9 = scmp.eq.s32.totalorder %s144_s14, 0 }
  0x18   : > { %p52_p10 = scmp.eq.s32.totalorder %s49_s18, 0  ;;  %p160_p11 = scmp.eq.s32.totalorder %s602_s26, 3 }
  0x19   : > { %s1032_s30 = scalar_select %p147_p9, %s877_s17, %s149_s13  }
  0x1a   : > { %s1035_s27 = scalar_select %p52_p10, %s889_s20, %s54_s6  }
  0x1b   : > { %p1037_p12 = por %p160_p11, %p159_p8  ;;  %p165_p13 = scmp.ne.s32.totalorder %s873_s16, %s869_s15 }
  0x1c   : > { %1182 = sst [smem:[#allocation17_spill]] %s1035_s27  ;;  %s1184_s10 = sadd.s32 4294967294, %s909_s25  }
  0x1d   : > { %p166_p0 = scmp.eq.s32.totalorder %s1184_s10, 3  ;;  %p655_p1 = scmp.lt.s32.totalorder %s909_s25, 4 }
  0x1e   : > { %s195_s9 = sand.u32 1, %s889_s20   ;;  %s629_s12 = sshll.u32 %s1001_s5, 6 }
  0x1f   : > { %p1047_p2 = por %p166_p0, %p165_p13  ;;  %s606_s26 = sshll.u32 %s195_s9, 6 }
  0x20   : > { %s209_s14 = scalar_lea.hbm %s1167_s0, %s629_s12  ;;  %s199_s29 = scalar_lea.vmem [#allocation7], %s606_s26 }
  0x21   : > { %s210_s18 = sshll.u32 %s209_s14, 4  ;;  %s212_s28 = sshll.u32 %s199_s29, 4  ;;  %s211_s18 = int_to_ptr.hbm [resolvable:$true] %s210_s18  ;;  %s213_s28 = int_to_ptr.vmem [resolvable:$true] %s212_s28 }
  0x22   : > { %p648_p3 = pnand %p655_p1, %p1011_p5  ;;  %p609_p4 = scmp.ge.s32.totalorder %s909_s25, 1 }
  0x23   : > { %p220_p6 = scmp.lt.s32.totalorder %s909_s25, 5  ;;  %s196_s10 = scalar_lea.sflag [#allocation8], %s195_s9 }
  0x24   : > { %s911_s23 = smov 256   ;;  %s912_s27 = smov 16  }
  0x25   : > { %650 = dma.hbm_to_vmem [thread:$0]  (!%p648_p3), %s211_s18, 1024, %s213_s28, %s196_s10, %s911_s23, %s911_s23, %s912_s27  }
  0x26   : > { %p221_p8 = pnand %p609_p4, %p220_p6 }
  0x27   : > { %s226_s5 = sand.u32 (!%p221_p8), 1, %s885_s19  }
  0x28   : > { %224 = sbr.rel (%p221_p8) target bundleno = 533 (0x215), region = 36  ;;  %s610_s13 = sshll.u32 (!%p221_p8), %s226_s5, 6 }
  0x29   : > { %s227_s12 = scalar_lea.sflag (!%p221_p8), [#allocation8], %s226_s5  ;;  %s1060_s6 = scalar_lea.vmem (!%p221_p8), [#allocation7], %s610_s13 }
  0x2d   : > { %860 = dma.done.wait (%p1017_p7), %s227_s12, 1024  }
  0x2e   : > { %862 = vsyncadd (%p1017_p7), %s227_s12, 4294966272  ;;  %s253_s23 = sand.u32 1, %s873_s16   ;;  %p264_p5 = scmp.eq.s32.totalorder %s897_s22, 0 }
  0x2f   : > { %s611_s27 = sshll.u32 %s253_s23, 5  ;;  %p265_p9 = scmp.eq.s32.totalorder %s893_s21, 0 }
  0x30   : > { %s1073_s28 = scalar_lea.vmem [#allocation10], %s611_s27 }
  0x31   : > { %p269_p10 = pnand %p265_p9, %p264_p5 }
  0x33   : > { %272 = sbr.rel (%p269_p10) target bundleno = 61 (0x3d), region = 44 }
  0x38   : > { %vm273_vm0 = vcmask 7168   ;;  %v913_v0 = vmov 0.0  }
  0x39   : > { %274 = vst.msk [vmem:[#allocation3] sm:$0xff] %vm273_vm0, %v913_v0 }
  0x3a   : > { %275 = vst.msk [vmem:[#allocation3 + $0x8] sm:$0xff] %vm273_vm0, %v913_v0 }
  0x3b   : > { %276 = vst.msk [vmem:[#allocation4] sm:$0xff] %vm273_vm0, %v913_v0 }
  0x3c   : > { %277 = vst.msk [vmem:[#allocation4 + $0x8] sm:$0xff] %vm273_vm0, %v913_v0 }
  0x3d PF: > { %p613_p7 = scmp.ne.s32.totalorder %s897_s22, 0 }
  0x3e   : > { %s631_s26 = sshll.u32 (!%p613_p7), %s893_s21, 5 }
  0x3f   : > { %280 = sbr.rel (%p613_p7) target bundleno = 333 (0x14d), region = 48  ;;  %s346_s14 = scalar_lea.vmem (!%p613_p7), [#allocation2], %s631_s26 }
  0x44   : > { %v289_v1 = vld [vmem:[%s1060_s6 + $0x30] sm:$0xff]  ;;  %v290_v2 = vld [vmem:[%s1060_s6 + $0x38] sm:$0xff]  ;;  %v287_v3 = vld [vmem:[%s1060_s6 + $0x20] sm:$0xff]  ;;  %vm291_vm1 = vcmask 261120   ;;  %vm361_vm2 = vcmask 7168  }
  0x45   : > { %310 = vmatpush.msra.mxu0 %v289_v1  ;;  %333 = vmatpush.msra.mxu1 %v290_v2  ;;  %v288_v4 = vld [vmem:[%s1060_s6 + $0x28] sm:$0xff]  ;;  %v285_v5 = vld [vmem:[%s1060_s6 + $0x10] sm:$0xff]  ;;  %v286_v6 = vld [vmem:[%s1060_s6 + $0x18] sm:$0xff] }
  0x46   : > { %635 = vmatpush.msra.mxu2 %v289_v1  ;;  %639 = vmatpush.msra.mxu3 %v290_v2  ;;  %v283_v7 = vld [vmem:[%s1060_s6] sm:$0xff]  ;;  %v284_v8 = vld [vmem:[%s1060_s6 + $0x8] sm:$0xff]  ;;  %v364_v25 = vld [vmem:[#allocation4] sm:$0xff] }
  0x47   : > { %311 = vmatpush.msra.mxu0 %v287_v3  ;;  %334 = vmatpush.msra.mxu1 %v288_v4  ;;  %v281_v9 = vld [vmem:[%s1168_s1] sm:$0xff]  ;;  %v282_v10 = vld [vmem:[%s1168_s1 + $0x8] sm:$0xff]  ;;  %v365_v31 = vld [vmem:[#allocation4 + $0x8] sm:$0xff] }
  0x48   : > { %636 = vmatpush.msra.mxu2 %v287_v3  ;;  %640 = vmatpush.msra.mxu3 %v288_v4  ;;  %v351_v23 = vld [vmem:[#allocation3] sm:$0xff]  ;;  %v352_v29 = vld [vmem:[#allocation3 + $0x8] sm:$0xff] }
  0x49   : > { %312 = vmatpush.msra.mxu0 %v285_v5  ;;  %335 = vmatpush.msra.mxu1 %v286_v6 }
  0x4a   : > { %637 = vmatpush.msra.mxu2 %v285_v5  ;;  %641 = vmatpush.msra.mxu3 %v286_v6 }
  0x4b   : > { %313 = vmatpush.msra.mxu0 %v283_v7  ;;  %336 = vmatpush.msra.mxu1 %v284_v8 }
  0x4c   : > { %614 = vmatmul.msk.f32.vlgmr.msra.gmra.mxu0 %vm291_vm1, %v281_v9  ;;  %616 = vmatmul.msk.f32.vlgmr.msra.gmra.mxu1 %vm291_vm1, %v281_v9 }
  0x4d   : > { %638 = vmatpush.msra.mxu2 %v283_v7  ;;  %642 = vmatpush.msra.mxu3 %v284_v8 }
  0x4e   : > { %615 = vmatmul.msk.f32.vlgmr.msra.gmra.mxu2 %vm291_vm1, %v282_v10  ;;  %617 = vmatmul.msk.f32.vlgmr.msra.gmra.mxu3 %vm291_vm1, %v282_v10 }
  0xc9   : > { %v315_v11 = vpop.f32.mrf.mxu0  ;;  %v338_v12 = vpop.f32.mrf.mxu1 }
  0xca   : > { %347 = vst [vmem:[%s346_s14] sm:$0xff] %v315_v11  ;;  %v366_v13 = vmul.f32 %v315_v11, %v315_v11  ;;  %v367_v14 = vmul.f32 %v338_v12, %v338_v12  ;;  %v353_v15 = vadd.f32 %v338_v12, %v315_v11 }
  0xcb   : > { %348 = vst [vmem:[%s346_s14 + $0x8] sm:$0xff] %v338_v12 }
  0xcc   : > { %354 = vadd.xlane.f32.xlu0 %v353_v15  ;;  %v370_v16 = vadd.f32 %v367_v14, %v366_v13 }
  0xce   : > { %371 = vadd.xlane.f32.xlu1 %v370_v16 }
  0xd1   : > { %v318_v17 = vpop.f32.mrf.mxu2  ;;  %v341_v18 = vpop.f32.mrf.mxu3 }
  0xd2   : > { %349 = vst [vmem:[%s346_s14 + $0x10] sm:$0xff] %v318_v17  ;;  %v368_v19 = vmul.f32 %v318_v17, %v318_v17  ;;  %v369_v20 = vmul.f32 %v341_v18, %v341_v18  ;;  %v356_v21 = vadd.f32 %v341_v18, %v318_v17 }
  0xd3   : > { %350 = vst [vmem:[%s346_s14 + $0x18] sm:$0xff] %v341_v18 }
  0xd4   : > { %357 = vadd.xlane.f32.xlu0 %v356_v21  ;;  %v373_v22 = vadd.f32 %v369_v20, %v368_v19 }
  0xd6   : > { %374 = vadd.xlane.f32.xlu1 %v373_v22 }
 0x13f   : > { %v355_v24 = vpop.xlane.xlu0 %354 }
 0x140   : > { %v359_v26 = vadd.f32 %v355_v24, %v351_v23 }
 0x141   : > { %v372_v27 = vpop.xlane.xlu1 %371 }
 0x142   : > { %362 = vst.msk [vmem:[#allocation3] sm:$0xff] %vm361_vm2, %v359_v26  ;;  %v376_v28 = vadd.f32 %v372_v27, %v364_v25 }
 0x144   : > { %378 = vst.msk [vmem:[#allocation4] sm:$0xff] %vm361_vm2, %v376_v28 }
 0x147   : > { %v358_v30 = vpop.xlane.xlu0 %357 }
 0x148   : > { %v360_v32 = vadd.f32 %v358_v30, %v352_v29 }
 0x149   : > { %v375_v33 = vpop.xlane.xlu1 %374 }
 0x14a   : > { %363 = vst.msk [vmem:[#allocation3 + $0x8] sm:$0xff] %vm361_vm2, %v360_v32  ;;  %v377_v34 = vadd.f32 %v375_v33, %v365_v31 }
 0x14c   : > { %379 = vst.msk [vmem:[#allocation4 + $0x8] sm:$0xff] %vm361_vm2, %v377_v34 }
 0x14d PF: > { %p380_p11 = scmp.eq.s32.totalorder %s893_s21, 1 }
 0x14f   : > { %p383_p13 = pnand %p380_p11, %p264_p5 }
 0x151   : > { %386 = sbr.rel (%p383_p13) target bundleno = 377 (0x179), region = 52 }
 0x156   : > { %v387_v35 = vld [vmem:[#allocation3] sm:$0xff]  ;;  %v391_v36 = vld [vmem:[#allocation4] sm:$0xff]  ;;  %v388_v39 = vld [vmem:[#allocation3 + $0x8] sm:$0xff]  ;;  %vm425_vm9 = vcmask 7168  }
 0x157   : > { %v389_v37 = vmul.f32 0.001953125, %v387_v35  ;;  %v393_v38 = vmul.f32 0.001953125, %v391_v36  ;;  %v392_v40 = vld [vmem:[#allocation4 + $0x8] sm:$0xff]  ;;  %v390_v41 = vmul.f32 0.001953125, %v388_v39  ;;  %v421_v60 = vld [vmem:[%s1169_s2] sm:$0xff]  ;;  %v422_v62 = vld [vmem:[%s1169_s2 + $0x8] sm:$0xff] }
 0x158   : > { %v394_v42 = vmul.f32 0.001953125, %v392_v40  ;;  %v428_v3 = vld [vmem:[%s1170_s3] sm:$0xff]  ;;  %v429_v5 = vld [vmem:[%s1170_s3 + $0x8] sm:$0xff] }
 0x159   : > { %v395_v43 = vmul.f32 %v389_v37, %v389_v37  ;;  %v396_v44 = vmul.f32 %v390_v41, %v390_v41 }
 0x15b   : > { %v397_v45 = vsub.f32 %v393_v38, %v395_v43  ;;  %v398_v46 = vsub.f32 %v394_v42, %v396_v44 }
 0x15d   : > { %v399_v47 = vadd.f32 1e-05, %v397_v45  ;;  %v400_v48 = vadd.f32 1e-05, %v398_v46 }
 0x15f   : > { %751 = vrsqrt.f32 %v399_v47  ;;  %vm407_vm3 = vweird.f32 %v399_v47  ;;  %vm417_vm5 = vweird.f32 %v400_v48 }
 0x160   : > { %753 = vrsqrt.f32 %v400_v48 }
 0x165   : > { %v752_v49 = vpop.eup %751 }
 0x166   : > { %v754_v50 = vpop.eup %753  ;;  %v402_v51 = vmul.f32 %v752_v49, %v399_v47  ;;  %vm408_vm4 = vweird.f32 %v752_v49 }
 0x167   : > { %v412_v52 = vmul.f32 %v754_v50, %v400_v48  ;;  %vm418_vm6 = vweird.f32 %v754_v50  ;;  %vm409_vm7 = vmor %vm407_vm3, %vm408_vm4 }
 0x168   : > { %v403_v53 = vmul.f32 %v752_v49, %v402_v51  ;;  %vm419_vm8 = vmor %vm417_vm5, %vm418_vm6 }
 0x169   : > { %v413_v54 = vmul.f32 %v754_v50, %v412_v52 }
 0x16a   : > { %v404_v55 = vmul.f32 0.5, %v403_v53 }
 0x16b   : > { %v414_v56 = vmul.f32 0.5, %v413_v54 }
 0x16c   : > { %v405_v57 = vsub.f32 1.5, %v404_v55 }
 0x16d   : > { %v415_v58 = vsub.f32 1.5, %v414_v56 }
 0x16e   : > { %v406_v59 = vmul.f32 %v752_v49, %v405_v57 }
 0x16f   : > { %v416_v61 = vmul.f32 %v754_v50, %v415_v58 }
 0x170   : > { %v410_v63 = vsel %vm409_vm7, %v752_v49, %v406_v59 }
 0x171   : > { %v423_v0 = vmul.f32 %v421_v60, %v410_v63  ;;  %v420_v1 = vsel %vm419_vm8, %v754_v50, %v416_v61 }
 0x172   : > { %v424_v2 = vmul.f32 %v422_v62, %v420_v1 }
 0x173   : > { %426 = vst.msk [vmem:[#allocation5] sm:$0xff] %vm425_vm9, %v423_v0  ;;  %v430_v4 = vmul.f32 %v423_v0, %v389_v37 }
 0x174   : > { %427 = vst.msk [vmem:[#allocation5 + $0x8] sm:$0xff] %vm425_vm9, %v424_v2  ;;  %v431_v6 = vmul.f32 %v424_v2, %v390_v41 }
 0x175   : > { %v432_v7 = vsub.f32 %v428_v3, %v430_v4 }
 0x176   : > { %v433_v8 = vsub.f32 %v429_v5, %v431_v6 }
 0x177   : > { %434 = vst.msk [vmem:[#allocation6] sm:$0xff] %vm425_vm9, %v432_v7 }
 0x178   : > { %435 = vst.msk [vmem:[#allocation6 + $0x8] sm:$0xff] %vm425_vm9, %v433_v8 }
 0x179 PF: > { %p621_p0 = scmp.ne.s32.totalorder %s897_s22, 1 }
 0x17a   : > { %s633_s7 = sshll.u32 (!%p621_p0), %s893_s21, 5 }
 0x17b   : > { %439 = sbr.rel (%p621_p0) target bundleno = 515 (0x203), region = 56  ;;  %s442_s8 = scalar_lea.vmem (!%p621_p0), [#allocation2], %s633_s7 }
 0x180   : > { %v463_v9 = vld [vmem:[#allocation6] sm:$0xff]  ;;  %v447_v10 = vld [vmem:[#allocation5] sm:$0xff]  ;;  %v914_v11 = vmov 0   ;;  %v464_v12 = vld [vmem:[#allocation6 + $0x8] sm:$0xff] }
 0x181   : > { %756 = vset.pattern.permute.xlu1 %v914_v11  ;;  %755 = vset.pattern.permute.xlu0 %v914_v11  ;;  %v448_v13 = vld [vmem:[#allocation5 + $0x8] sm:$0xff]  ;;  %v443_v14 = vld [vmem:[%s442_s8] sm:$0xff]  ;;  %v445_v22 = vld [vmem:[%s442_s8 + $0x10] sm:$0xff] }
 0x182   : > { %467 = vperm.xlu1 %756, %v463_v9   ;;  %451 = vperm.xlu0 %755, %v447_v10   ;;  %v444_v15 = vld [vmem:[%s442_s8 + $0x8] sm:$0xff]  ;;  %v446_v23 = vld [vmem:[%s442_s8 + $0x18] sm:$0xff] }
 0x18a   : > { %472 = vperm.xlu1 %756, %v464_v12   ;;  %456 = vperm.xlu0 %755, %v448_v13  }
 0x1f4   : > { %v468_v16 = vpop.permute.xlu1 %467  ;;  %v452_v17 = vpop.permute.xlu0 %451 }
 0x1f5   : > { %v459_v18 = vmul.f32 %v452_v17, %v443_v14  ;;  %v460_v19 = vmul.f32 %v452_v17, %v444_v15 }
 0x1f7   : > { %v475_v20 = vadd.f32 %v468_v16, %v459_v18  ;;  %v476_v21 = vadd.f32 %v468_v16, %v460_v19 }
 0x1f9   : > { %479 = vst [vmem:[%s1073_s28] sm:$0xff] %v475_v20 }
 0x1fa   : > { %480 = vst [vmem:[%s1073_s28 + $0x8] sm:$0xff] %v476_v21 }
 0x1fc   : > { %v457_v24 = vpop.permute.xlu0 %456  ;;  %v473_v27 = vpop.permute.xlu1 %472 }
 0x1fd   : > { %v461_v25 = vmul.f32 %v457_v24, %v445_v22  ;;  %v462_v26 = vmul.f32 %v457_v24, %v446_v23 }
 0x1ff   : > { %v477_v28 = vadd.f32 %v473_v27, %v461_v25  ;;  %v478_v29 = vadd.f32 %v473_v27, %v462_v26 }
 0x201   : > { %481 = vst [vmem:[%s1073_s28 + $0x10] sm:$0xff] %v477_v28 }
 0x202   : > { %482 = vst [vmem:[%s1073_s28 + $0x18] sm:$0xff] %v478_v29 }
 0x203 PF: > { %s491_s9 = smul.u32 %s893_s21, %s897_s22  ;;  %s500_s26 = sshll.u32 %s1073_s28, 4  ;;  %s501_s26 = int_to_ptr.vmem [resolvable:$true] %s500_s26 }
 0x204   : > { %s484_s12 = scalar_lea.sflag [#allocation9], %s253_s23  ;;  %s807_s22 = scalar_lea.hbm %s1171_s4, 64 }
 0x205   : > { %s634_s14 = sshll.u32 %s491_s9, 5 }
 0x206   : > { %s499_s5 = scalar_lea.hbm %s1171_s4, %s634_s14 }
 0x207   : > { %s502_s13 = sshll.u32 %s499_s5, 4  ;;  %s503_s13 = int_to_ptr.hbm [resolvable:$true] %s502_s13 }
 0x208   : > { %s801_s6 = sshra.s32 %s503_s13, 4  ;;  %s802_s6 = int_to_ptr.hbm [resolvable:$true] %s801_s6 }
 0x209   : > { %s803_s27 = scalar_lea.hbm %s802_s6, 32  ;;  %p808_p6 = scmp.lt.s32.totalorder %s802_s6, %s1171_s4 }
 0x20a   : > { %p804_p1 = scmp.ne.s32.totalorder %s802_s6, %s803_s27  ;;  %p809_p8 = scmp.lt.s32.totalorder %s807_s22, %s803_s27 }
 0x20c   : > { %p805_p3 = pnand %p804_p1, %p1037_p12  ;;  %p810_p5 = por %p809_p8, %p808_p6 }
 0x20e   : > { %p806_p4 = pneg %p805_p3 }
 0x210   : > { %p811_p9 = pnand %p810_p5, %p806_p4 }
 0x212   : > { %814 = shalt.err (!%p811_p9)
}
 0x213   : > { %s915_s23 = smov 256   ;;  %s916_s8 = smov 16  }
 0x214   : > { %645 = dma.vmem_to_hbm [thread:$0]  (%p1037_p12), %s501_s26, 512, %s503_s13, %s484_s12, %s915_s23, %s915_s23, %s916_s8  }
 0x215 PF: > { %p656_p10 = scmp.ge.s32.totalorder %s909_s25, 2  ;;  %s517_s9 = sand.u32 1, %s869_s15  }
 0x216   : > { %s518_s14 = scalar_lea.sflag [#allocation9], %s517_s9 }
 0x217   : > { %p652_p7 = pnand %p656_p10, %p1047_p2 }
 0x219   : > { %p653_p11 = pneg %p652_p7 }
 0x21b   : > { %864 = dma.done.wait (%p653_p11), %s518_s14, 512  }
 0x21c   : > { %866 = vsyncadd (%p653_p11), %s518_s14, 4294966784  ;;  %s20_s25 = sadd.s32 1, %s909_s25   ;;  %s1186_s24 = sld [smem:[#allocation17_spill]] }
 0x21d   : > { %p17_p13 = scmp.ge.s32.totalorder %s20_s25, 6   ;;  %s1187_s21 = sld [smem:[#allocation13_spill]] }
 0x21e   : > { %s1188_s22 = sld [smem:[#allocation14_spill]]  ;;  %s1191_s15 = smov %s873_s16 }
 0x21f   : > { %s1189_s23 = sld [smem:[#allocation15_spill]]  ;;  %s1192_s16 = smov %s877_s17 }
 0x220   : > { %s1190_s26 = sld [smem:[#allocation16_spill]]  ;;  %s1193_s17 = smov %s1032_s30 }
 0x221   : > { %s1194_s18 = smov %s885_s19  ;;  %s1195_s19 = smov %s889_s20 }
 0x222   : > { %s1196_s20 = smov %s1186_s24  ;;  %19 = sbr.rel (!%p17_p13) target bundleno = 9 (0x9), region = 99 }
 0x226   : > { %s1197_s24 = smov %s1190_s26 }
 0x227   :  { %524 = vsyncpa [#allocation8], 1 }
 0x228   :  { %526 = vsyncpa [#allocation8 + $0x1], 1 }
 0x229   :  { %527 = vsyncpa [#allocation9], 1 }
 0x22a   :  { %529 = vsyncpa [#allocation9 + $0x1], 1 }

</bundles_post_ra>
